<compile_context>
chip_gen: v7x
topology: tpu7x:2x2x1
jax: 0.10.0
libtpu: 0.0.40
codegen_flags: <defaults>
</compile_context>

<pallas_src>
import functools

import jax
import jax.numpy as jnp
from jax.experimental import pallas as pl
from jax.experimental.pallas import tpu as pltpu


def _fused_mlp_kernel(*refs, num_layers, layer_sizes):
    """Single-kernel MLP forward.

    refs = (x_ref, w0_ref, ..., w{L-1}_ref, bias_ref, o_ref)
      x_ref    : (B, D0)               VMEM, f32
      wi_ref   : (Di, D{i+1})          VMEM, bf16 (pre-transposed to (in, out))
      bias_ref : (num_layers, Dmax)    VMEM, f32 (row i = layer-i bias, zero padded)
      o_ref    : (B, D_last)           VMEM, f32
    Intermediate activations stay on-chip between layers.
    """
    x_ref = refs[0]
    bias_ref = refs[1 + num_layers]
    o_ref = refs[-1]

    h = x_ref[...]                                          # f32 (B, D0)
    for i in range(num_layers):
        w_ref = refs[1 + i]
        dout = layer_sizes[i + 1]
        # bf16 MXU fast path, f32 accumulation.
        h = jnp.dot(h.astype(jnp.bfloat16), w_ref[...],
                    preferred_element_type=jnp.float32)
        h = h + bias_ref[i:i + 1, :dout]                    # f32 bias add (VPU)
        if i < num_layers - 1:                              # ReLU between hidden layers only
            h = jnp.maximum(h, 0.0)
    o_ref[...] = h.astype(o_ref.dtype)


def fused_mlp_forward(x, weights, bias_stack, layer_sizes):
    """One grid-less pallas_call for the whole MLP (everything resident in VMEM)."""
    num_layers = len(weights)
    batch = x.shape[0]
    d_out = layer_sizes[-1]

    vmem = pl.BlockSpec(memory_space=pltpu.MemorySpace.VMEM)
    kernel = functools.partial(
        _fused_mlp_kernel, num_layers=num_layers, layer_sizes=tuple(layer_sizes)
    )

    return pl.pallas_call(
        kernel,
        out_shape=jax.ShapeDtypeStruct((batch, d_out), x.dtype),
        in_specs=[vmem] * (1 + num_layers + 1),
        out_specs=vmem,
    )(x, *weights, bias_stack)


class PallasMLP:
    """Dense network matching the PyTorch MLP forward semantics (ReLU activation)."""

    def __init__(self, layer_sizes, key):
        self.layer_sizes = list(layer_sizes)
        self.num_layers = len(layer_sizes) - 1
        self.params_f32 = []       # PyTorch-layout f32 params, for the references
        weights = []               # native-shape (in, out) bf16 weights for the kernel
        max_dout = max(layer_sizes[1:])
        bias_stack = jnp.zeros((self.num_layers, max_dout), jnp.float32)

        for i in range(self.num_layers):
            fan_in, fan_out = layer_sizes[i], layer_sizes[i + 1]
            key, wk, bk = jax.random.split(key, 3)
            # Deterministic init mimicking torch.nn.Linear's U(-1/sqrt(fan_in), 1/sqrt(fan_in))
            bound = 1.0 / (fan_in ** 0.5)
            w = jax.random.uniform(
                wk, (fan_out, fan_in), jnp.float32, minval=-bound, maxval=bound
            )
            b = jax.random.uniform(
                bk, (fan_out,), jnp.float32, minval=-bound, maxval=bound
            )
            self.params_f32.append((w, b))
            weights.append(w.T.astype(jnp.bfloat16))        # one-time transpose + bf16 cast
            bias_stack = bias_stack.at[i, :fan_out].set(b)

        self.weights = weights
        self.bias_stack = bias_stack

        layer_sizes_t = tuple(layer_sizes)

        def _fwd(x, ws, bs):
            return fused_mlp_forward(x, ws, bs, layer_sizes_t)

        self._fwd = jax.jit(_fwd)

    def __call__(self, x):
        return self._fwd(x, self.weights, self.bias_stack)


def reference_mlp_bf16(x, params_f32):
    """Pure-JAX reference matching the kernel math exactly (bf16 operands, f32 acc)."""
    n = len(params_f32)
    h = x
    for i, (w, b) in enumerate(params_f32):
        h = jnp.dot(h.astype(jnp.bfloat16), w.T.astype(jnp.bfloat16),
                    preferred_element_type=jnp.float32) + b
        if i < n - 1:
            h = jnp.maximum(h, 0.0)
    return h


def reference_mlp_f32(x, params_f32):
    """Pure-f32 PyTorch-semantics reference (loose check: bf16 weight quantization)."""
    n = len(params_f32)
    for i, (w, b) in enumerate(params_f32):
        x = x @ w.T + b
        if i < n - 1:
            x = jnp.maximum(x, 0.0)
    return x


if __name__ == "__main__":
    key = jax.random.PRNGKey(0)
    key, xk, mk = jax.random.split(key, 3)

    layer_sizes = [32, 64, 48, 16]   # 3 Linear layers, ReLU after the first two
    batch = 8

    x = jax.random.normal(xk, (batch, layer_sizes[0]), jnp.float32)

    mlp = PallasMLP(layer_sizes, mk)
    out = jax.block_until_ready(mlp(x))

    assert out.shape == (batch, layer_sizes[-1])

    # Tight check vs. a reference that uses identical bf16 operands / f32 accumulation.
    ref_exact = reference_mlp_bf16(x, mlp.params_f32)
    assert jnp.allclose(out, ref_exact, atol=1e-4, rtol=1e-4), "mismatch vs bf16 reference"

    # Loose sanity check vs. full-f32 PyTorch semantics (bounds bf16 weight quant error).
    ref_f32 = reference_mlp_f32(x, mlp.params_f32)
    assert jnp.allclose(out, ref_f32, atol=5e-2, rtol=5e-2), "drift vs f32 reference"

    print("KERNEL_OK")
</pallas_src>

<mosaic_0001>
module attributes {stable_mosaic.version = 11 : i64} {
  func.func @_fused_mlp_kernel(%arg0: memref<8x32xf32, #tpu.memory_space<vmem>>, %arg1: memref<32x64xbf16, #tpu.memory_space<vmem>>, %arg2: memref<64x48xbf16, #tpu.memory_space<vmem>>, %arg3: memref<48x16xbf16, #tpu.memory_space<vmem>>, %arg4: memref<3x64xf32, #tpu.memory_space<vmem>>, %arg5: memref<8x16xf32, #tpu.memory_space<vmem>>) attributes {dimension_semantics = [], scalar_prefetch = 0 : i64, scratch_operands = 0 : i64, tpu.core_type = #tpu.core_type<tc>} {
    %c0 = arith.constant 0 : index
    %c0_0 = arith.constant 0 : index
    %0 = vector.load %arg0[%c0, %c0_0] : memref<8x32xf32, #tpu.memory_space<vmem>>, vector<8x32xf32>
    %1 = arith.truncf %0 : vector<8x32xf32> to vector<8x32xbf16>
    %c0_1 = arith.constant 0 : index
    %c0_2 = arith.constant 0 : index
    %2 = vector.load %arg1[%c0_1, %c0_2] : memref<32x64xbf16, #tpu.memory_space<vmem>>, vector<32x64xbf16>
    %cst = arith.constant dense<0.000000e+00> : vector<8x64xf32>
    %3 = tpu.matmul %1, %2, %cst {dimension_numbers = #tpu.dot_dimension_numbers<[1], [0], [0], [1], [0, 0, 1, 1], [], []>} : vector<8x32xbf16>, vector<32x64xbf16>, vector<8x64xf32> -> vector<8x64xf32>
    %c0_3 = arith.constant 0 : index
    %c0_4 = arith.constant 0 : index
    %4 = vector.load %arg4[%c0_3, %c0_4] : memref<3x64xf32, #tpu.memory_space<vmem>>, vector<1x64xf32>
    %5 = vector.broadcast %4 : vector<1x64xf32> to vector<8x64xf32>
    %6 = arith.addf %3, %5 : vector<8x64xf32>
    %cst_5 = arith.constant 0.000000e+00 : f32
    %7 = vector.broadcast %cst_5 : f32 to vector<8x64xf32>
    %8 = arith.maximumf %6, %7 : vector<8x64xf32>
    %9 = arith.truncf %8 : vector<8x64xf32> to vector<8x64xbf16>
    %c0_6 = arith.constant 0 : index
    %c0_7 = arith.constant 0 : index
    %10 = vector.load %arg2[%c0_6, %c0_7] : memref<64x48xbf16, #tpu.memory_space<vmem>>, vector<64x48xbf16>
    %cst_8 = arith.constant dense<0.000000e+00> : vector<8x48xf32>
    %11 = tpu.matmul %9, %10, %cst_8 {dimension_numbers = #tpu.dot_dimension_numbers<[1], [0], [0], [1], [0, 0, 1, 1], [], []>} : vector<8x64xbf16>, vector<64x48xbf16>, vector<8x48xf32> -> vector<8x48xf32>
    %c1 = arith.constant 1 : index
    %c0_9 = arith.constant 0 : index
    %12 = vector.load %arg4[%c1, %c0_9] : memref<3x64xf32, #tpu.memory_space<vmem>>, vector<1x48xf32>
    %13 = vector.broadcast %12 : vector<1x48xf32> to vector<8x48xf32>
    %14 = arith.addf %11, %13 : vector<8x48xf32>
    %cst_10 = arith.constant 0.000000e+00 : f32
    %15 = vector.broadcast %cst_10 : f32 to vector<8x48xf32>
    %16 = arith.maximumf %14, %15 : vector<8x48xf32>
    %17 = arith.truncf %16 : vector<8x48xf32> to vector<8x48xbf16>
    %c0_11 = arith.constant 0 : index
    %c0_12 = arith.constant 0 : index
    %18 = vector.load %arg3[%c0_11, %c0_12] : memref<48x16xbf16, #tpu.memory_space<vmem>>, vector<48x16xbf16>
    %cst_13 = arith.constant dense<0.000000e+00> : vector<8x16xf32>
    %19 = tpu.matmul %17, %18, %cst_13 {dimension_numbers = #tpu.dot_dimension_numbers<[1], [0], [0], [1], [0, 0, 1, 1], [], []>} : vector<8x48xbf16>, vector<48x16xbf16>, vector<8x16xf32> -> vector<8x16xf32>
    %c2 = arith.constant 2 : index
    %c0_14 = arith.constant 0 : index
    %20 = vector.load %arg4[%c2, %c0_14] : memref<3x64xf32, #tpu.memory_space<vmem>>, vector<1x16xf32>
    %21 = vector.broadcast %20 : vector<1x16xf32> to vector<8x16xf32>
    %22 = arith.addf %19, %21 : vector<8x16xf32>
    %c0_15 = arith.constant 0 : index
    %c0_16 = arith.constant 0 : index
    %23 = vector.load %arg5[%c0_15, %c0_16] : memref<8x16xf32, #tpu.memory_space<vmem>>, vector<8x16xf32>
    tpu.vector_store %arg5[%c0_15, %c0_16], %22 {strides = array<i32>} : memref<8x16xf32, #tpu.memory_space<vmem>>, vector<8x16xf32>,
    return
  }
}

</mosaic_0001>

<bundles_post_ra>
// kernel: _fwd.1
= control target key start
LH: loop header
LB: loop body
LE: loop exit
PB: predicated region body
PF: predicated region fallthrough
CT: control target
= control target key end

     0   :  { %v356_v1 = vmov 0.0   ;;  %vm357_vm0 = vmmov 0   ;;  %vm45_vm1 = vcmask 261120   ;;  %s443_s0 = inlined_call_operand.vmem [shape: f32[8,32], index: 0, kind: input, shape index: {}]   ;;  %s444_s1 = inlined_call_operand.vmem [shape: bf16[32,64], index: 1, kind: input, shape index: {}]   ;;  %s445_s2 = inlined_call_operand.vmem [shape: bf16[64,48], index: 2, kind: input, shape index: {}]   ;;  %s446_s3 = inlined_call_operand.vmem [shape: bf16[48,16], index: 3, kind: input, shape index: {}]   ;;  %s447_s4 = inlined_call_operand.vmem [shape: f32[3,64], index: 4, kind: input, shape index: {}]   ;;  %s448_s5 = inlined_call_operand.hbm [shape: f32[8,16], index: 5, kind: output, shape index: {}]  }
   0x1   :  { %v323_v0 = vld [vmem:[%s444_s1] sm:$0xff]   ;;  %290 = vmatprep.subr.bf16.mxu0 %v356_v1  ;;  %v324_v2 = vld [vmem:[%s444_s1 + $0x8] sm:$0xff]   ;;  %298 = vmatprep.subr.bf16.mxu1 %v356_v1 }
   0x2   :  { %291 = vmatpush3.bf16.msra.mxu0 %v323_v0  ;;  %294 = vmatprep.mubr.msk.bf16.mxu0 %vm357_vm0, %v356_v1  ;;  %v22_v3 = vld [vmem:[%s443_s0] sm:$0xff]  ;;  %v326_v5 = vld [vmem:[%s445_s2 + $0x8] sm:$0xff]  }
   0x3   :  { %292 = vmatprep.subr.bf16.mxu0 %v356_v1  ;;  %v325_v4 = vld [vmem:[%s445_s2] sm:$0xff]   ;;  %306 = vmatprep.mubr.msk.bf16.mxu1 %vm357_vm0, %v356_v1  ;;  %v23_v6 = vpack.c.bf16 %v22_v3, %v22_v3 }
   0x4   :  { %299 = vmatpush3.bf16.msra.mxu1 %v325_v4 }
   0x5   :  { %300 = vmatprep.subr.bf16.mxu1 %v356_v1 }
   0x6   :  { %293 = vmatpush3.bf16.msra.mxu0 %v324_v2 }
   0x7   :  { %310 = vmatprep.subr.bf16.mxu0 %v356_v1 }
   0x8   :  { %10 = vsyncpa [#allocation3], 0  ;;  %301 = vmatpush3.bf16.msra.mxu1 %v326_v5  ;;  %v327_v7 = vld [vmem:[%s445_s2 + $0x10] sm:$0xff]   ;;  %v328_v8 = vld [vmem:[%s445_s2 + $0x18] sm:$0xff]   ;;  %vm128_vm2 = vcmask 523264   ;;  %vm203_vm3 = vcmask 392192  }
   0x9   :  { %295 = vmatmul.mubr.msk.bf16.vlgmr.msra.gmra.mrb[0].mxu0 %vm45_vm1, %v23_v6  ;;  %302 = vmatprep.subr.bf16.mxu1 %v356_v1  ;;  %v329_v9 = vld [vmem:[%s446_s3] sm:$0xff]   ;;  %v330_v18 = vld [vmem:[%s446_s3 + $0x8] sm:$0xff]   ;;  %v331_v19 = vld [vmem:[%s446_s3 + $0x10] sm:$0xff]   ;;  %s358_s16 = smov [#allocation2]   ;;  %vm247_vm4 = vcmask 130048  }
   0xa   :  { %316 = vmatprep.mubr.msk.bf16.mxu0 %vm357_vm0, %v356_v1  ;;  %311 = vmatpush3.bf16.msra.mxu0 %v329_v9  ;;  %v263_v10 = vld [vmem:[%s447_s4] ss:$0 sm:$0xff]  ;;  %v267_v20 = vld [vmem:[%s447_s4 + $0x1] ss:$0 sm:$0xff]  ;;  %v273_v28 = vld [vmem:[%s447_s4 + $0x2] ss:$0 sm:$0xff] }
   0xb   :  { %312 = vmatprep.subr.bf16.mxu0 %v356_v1  ;;  %s255_s3 = sshll.u32 %s358_s16, 4  ;;  %s256_s3 = int_to_ptr.vmem [resolvable:$true] %s255_s3 }
   0xc   :  { %303 = vmatpush3.bf16.msra.mxu1 %v327_v7  ;;  %s332_s17 = scalar_lea.vmem %s256_s3, 128  ;;  %p337_p1 = scmp.lt.s32.totalorder %s256_s3, %s256_s3 }
   0xd   :  { %304 = vmatprep.subr.bf16.mxu1 %v356_v1  ;;  %p333_p0 = scmp.ne.s32.totalorder %s256_s3, %s332_s17  ;;  %p338_p2 = scmp.lt.s32.totalorder %s332_s17, %s332_s17 }
   0xe   :  { %313 = vmatpush3.bf16.msra.mxu0 %v330_v18 }
   0xf   :  { %314 = vmatprep.subr.bf16.mxu0 %v356_v1  ;;  %p339_p3 = por %p338_p2, %p337_p1 }
  0x10   :  { %305 = vmatpush3.bf16.msra.mxu1 %v328_v8 }
  0x11   :  { %p340_p4 = pnand %p339_p3, %p333_p0 }
  0x12   :  { %315 = vmatpush3.bf16.msra.mxu0 %v331_v19 }
  0xdc   :  { %v83_v11 = vpop.f32.mrb[0].mxu0 }
  0xdd   :  { %v84_v12 = vadd.f32 %v263_v10, %v83_v11  ;;  %v296_v13 = vpop.f32.mrb[1].mxu0 }
  0xde   :  { %v86_v14 = vpop.f32.mrb[2].mxu0 }
  0xdf   :  { %v89_v15 = vmax.f32 %v84_v12, 0.0  ;;  %v297_v16 = vpop.f32.mrb[3].mxu0 }
  0xe1   :  { %v90_v17 = vpack.c.bf16 %v89_v15, %v89_v15 }
  0xe3   :  { %307 = vmatmul.mubr.msk.bf16.vlgmr.msra.gmra.mrb[0].mxu1 %vm128_vm2, %v90_v17 }
 0x1b6   :  { %v166_v21 = vpop.f32.mrb[0].mxu1 }
 0x1b7   :  { %v167_v22 = vadd.f32 %v267_v20, %v166_v21  ;;  %v308_v23 = vpop.f32.mrb[1].mxu1 }
 0x1b8   :  { %v169_v24 = vpop.f32.mrb[2].mxu1 }
 0x1b9   :  { %v172_v25 = vmax.f32 %v167_v22, 0.0  ;;  %v309_v26 = vpop.f32.mrb[3].mxu1 }
 0x1bb   :  { %v173_v27 = vpack.c.bf16 %v172_v25, %v172_v25 }
 0x1bd   :  { %317 = vmatmul.mubr.msk.bf16.vlgmr.msra.gmra.mrb[4].mxu0 %vm203_vm3, %v173_v27 }
 0x290   :  { %v241_v29 = vpop.f32.mrb[4].mxu0 }
 0x291   :  { %v242_v30 = vadd.f32 %v273_v28, %v241_v29  ;;  %v318_v31 = vpop.f32.mrb[5].mxu0 }
 0x292   :  { %v244_v32 = vpop.f32.mrb[6].mxu0 }
 0x293   :  { %v319_v33 = vpop.f32.mrb[7].mxu0  ;;  %248 = vst.msk [vmem:[#allocation2] sm:$0xff] %vm247_vm4, %v242_v30 }
 0x294   :  { %343 = shalt.err (!%p340_p4)
}
 0x295   :  { %s344_s4 = scalar_lea.hbm %s448_s5, 128 }
 0x296   :  { %p345_p5 = scmp.ne.s32.totalorder %s448_s5, %s344_s4  ;;  %p348_p6 = scmp.lt.u32.totalorder %s344_s4, %s448_s5 }
 0x298   :  { %p350_p7 = pnand %p348_p6, %p345_p5 }
 0x29a   :  { %353 = shalt.err (!%p350_p7)
}
 0x29b   :  { %258 = dma.vmem_to_hbm [thread:$0]  %s256_s3, 128, %s448_s5, [#allocation3]  }
 0x29c   :  { %354 = dma.done.wait [#allocation3], 128  }
 0x29d   :  { %355 = vsyncadd [#allocation3], 4294967168 }
 0x29e   :  { %262 = vsyncpa [#allocation3], 1 }

</bundles_post_ra>
